<compile_context>
chip_gen: v7x
topology: tpu7x:2x2x1
jax: 0.10.0
libtpu: 0.0.40
codegen_flags: <defaults>
</compile_context>

<pallas_src>
import math

import jax
import jax.numpy as jnp
from jax.experimental import pallas as pl
from jax.experimental.pallas import tpu as pltpu  # noqa: F401  (TPU backend)

D = 10                      # data_shape: length of the MSIR parameter vector
IDX_LADDER = (0, 1)         # ladder levels
L = len(IDX_LADDER)
LOG2PI = math.log(2.0 * math.pi)
_NORM_CONST = -0.5 * D * LOG2PI

# Constant row that torch's plain_convert returns (repeated over the batch).
_PLAIN_CONST = jnp.array(
    [[0.43, 7.35, 0.027, 0.9, 1.30537122, 3.11852393,
      0.03206678, 3.24118948, 0.31400672, 0.09410381]], dtype=jnp.float32)

# Hoisted constant log-determinants of the deterministic stand-in flows:
#   affine flow per ladder:  a_d = 1 + 0.05*(l+1)*d,  d = 1..D
#   pretrained scale row:    w_d = 0.5 + 0.05*d,      d = 1..D
_LOGDET_A = tuple(
    float(sum(math.log(abs(1.0 + 0.05 * (l + 1) * d)) for d in range(1, D + 1)))
    for l in IDX_LADDER)
_LOGDET_W = float(sum(math.log(abs(0.5 + 0.05 * d)) for d in range(1, D + 1)))


# --------------------------------------------------------------------------
# Fused kernel: per-ladder affine flow + Gaussian log-probs + pretrained tanh
# flow + final log_probq subtraction, in one launch.
#
# Outputs:
#   sx_ref : (L, B, D)  "pretrained" samples, one block per ladder
#   lp_ref : (B, 2L)    lane-packed columns [lpq_0, lpz_0, lpq_1, lpz_1]
# --------------------------------------------------------------------------
def _fused_kernel(x_ref, sx_ref, lp_ref):
    x = x_ref[...]                                            # (B, D) f32
    B = x.shape[0]

    # Parameter rows built from iota (no input DMAs, no captured constants).
    idx = jax.lax.broadcasted_iota(jnp.int32, (1, D), 1).astype(jnp.float32)
    w = 0.5 + 0.05 * (idx + 1.0)                              # pretrained scale
    cw = 0.1 * idx                                            # pretrained shift

    # Shared across ladders: base-dist log-prob of x (one XLU reduction total).
    lp_x = -0.5 * jnp.sum(x * x, axis=-1, keepdims=True) + _NORM_CONST   # (B,1)

    lp_cols = []
    for l in IDX_LADDER:                                      # static unroll, L=2
        # TODO(synk): `model.log_prob(x, ladder)` is an external flow passed at
        # call time; replaced by a deterministic per-ladder affine flow.
        a = 1.0 + 0.05 * (l + 1) * (idx + 1.0)                # (1, D)
        b = 0.01 * (l + 1)
        z = x * a + b                                         # (B, D)

        # Base-dist log-prob of z; reused as the pretrained flow's lp_base.
        lp_z = -0.5 * jnp.sum(z * z, axis=-1, keepdims=True) + _NORM_CONST

        lpq = lp_x - _LOGDET_A[l]                             # flow log q (hoisted logdet)

        # TODO(synk): `self.pretrained.log_prob` is an external pretrained flow;
        # replaced by a deterministic elementwise tanh flow.
        sx = jnp.tanh(z * w + cw)                             # (B, D)
        sx_ref[l] = sx

        logdet_pre = (jnp.sum(jnp.log(1.0 - sx * sx + 1e-6), axis=-1, keepdims=True)
                      + _LOGDET_W)
        lp_transformed = lp_z + logdet_pre                    # pretrained log-prob

        lp_cols.append(lpq - lp_transformed)                  # final log_probq
        lp_cols.append(lp_z)                                  # log_probz

    # Pack the four (B, 1) log-prob vectors into one lane-dense (B, 2L) store.
    lane = jax.lax.broadcasted_iota(jnp.int32, (B, 2 * L), 1)
    packed = jnp.zeros((B, 2 * L), jnp.float32)
    for k, col in enumerate(lp_cols):
        packed = jnp.where(lane == k, col, packed)            # (B,1) broadcasts
    lp_ref[...] = packed


def _fused_forward(x):
    B = x.shape[0]
    # Whole-array blocks (tiny shapes), single launch, default specs.
    # NOTE: if num_samples is ever scaled up, tile the batch axis with a
    # (TILE_B, D) BlockSpec grid and dimension_semantics=("parallel",).
    sx, lp = pl.pallas_call(
        _fused_kernel,
        out_shape=(jax.ShapeDtypeStruct((L, B, D), jnp.float32),
                   jax.ShapeDtypeStruct((B, 2 * L), jnp.float32)),
    )(x)
    return sx, lp


# --------------------------------------------------------------------------
# CanModel.forward
# --------------------------------------------------------------------------
def can_model_forward(num_samples, key, plain=False):
    # self.base_dist.sample(num_samples) -> standard normal (num_samples, D)
    x = jax.random.normal(key, (num_samples, D), dtype=jnp.float32)

    sx, lp = _fused_forward(x)

    sampled_x_ls = [sx[l] for l in range(L)]
    log_probq_ls = [lp[:, 2 * l] for l in range(L)]
    log_probz_ls = [lp[:, 2 * l + 1] for l in range(L)]

    # torch.chunk(log(10 * ones(N) / (8 * 4**6)), L)  -> pure constant.
    N = L * num_samples
    log_probp_ls = list(jnp.split(
        jnp.full((N,), math.log(10.0 / (8.0 * 4.0 ** 6)), dtype=jnp.float32), L))

    # TODO(synk): self.bound_q is None in this configuration -> branch skipped.

    if plain:
        # torch semantics: plain_convert computes a sigmoid path, discards it,
        # and returns a constant row repeated over the batch; sampled_x_ls is
        # reset inside the loop, so only the last ladder's (identical) result
        # survives.  Hence a single constant broadcast, no kernel needed.
        sampled_x_ls = [jnp.broadcast_to(_PLAIN_CONST, (num_samples, D))]

    return sampled_x_ls, log_probq_ls, log_probp_ls, log_probz_ls


if __name__ == "__main__":
    key = jax.random.PRNGKey(0)
    num_samples = 8

    # Non-plain path (exercises the fused kernel's sampled_x outputs).
    outs = can_model_forward(num_samples, key, plain=False)
    jax.block_until_ready(jax.tree_util.tree_leaves(outs))
    sampled_x_ls, log_probq_ls, log_probp_ls, log_probz_ls = outs
    assert len(sampled_x_ls) == L
    assert sampled_x_ls[0].shape == (num_samples, D)
    assert log_probq_ls[0].shape == (num_samples,)
    assert log_probp_ls[0].shape == (num_samples,)
    assert log_probz_ls[0].shape == (num_samples,)

    # Plain path (constant plain_convert output, torch reset-in-loop semantics).
    outs_plain = can_model_forward(num_samples, key, plain=True)
    jax.block_until_ready(jax.tree_util.tree_leaves(outs_plain))
    sampled_x_ls_p, log_probq_ls_p, _, _ = outs_plain
    assert len(sampled_x_ls_p) == 1
    assert sampled_x_ls_p[0].shape == (num_samples, D)
    assert log_probq_ls_p[0].shape == (num_samples,)

    print("KERNEL_OK")
</pallas_src>

<mosaic_0001>
module attributes {stable_mosaic.version = 11 : i64} {
  func.func @_fused_kernel(%arg0: memref<8x10xf32, #tpu.memory_space<vmem>>, %arg1: memref<2x8x10xf32, #tpu.memory_space<vmem>>, %arg2: memref<8x4xf32, #tpu.memory_space<vmem>>) attributes {dimension_semantics = [], scalar_prefetch = 0 : i64, scratch_operands = 0 : i64, tpu.core_type = #tpu.core_type<tc>} {
    %c0 = arith.constant 0 : index
    %c0_0 = arith.constant 0 : index
    %0 = vector.load %arg0[%c0, %c0_0] : memref<8x10xf32, #tpu.memory_space<vmem>>, vector<8x10xf32>
    %1 = tpu.iota {dimensions = array<i32: 1>} : vector<1x10xi32>
    %2 = arith.sitofp %1 : vector<1x10xi32> to vector<1x10xf32>
    %cst = arith.constant 1.000000e+00 : f32
    %3 = vector.broadcast %cst : f32 to vector<1x10xf32>
    %4 = arith.addf %2, %3 : vector<1x10xf32>
    %cst_1 = arith.constant 5.000000e-02 : f32
    %5 = vector.broadcast %cst_1 : f32 to vector<1x10xf32>
    %6 = arith.mulf %5, %4 : vector<1x10xf32>
    %cst_2 = arith.constant 5.000000e-01 : f32
    %7 = vector.broadcast %cst_2 : f32 to vector<1x10xf32>
    %8 = arith.addf %7, %6 : vector<1x10xf32>
    %cst_3 = arith.constant 1.000000e-01 : f32
    %9 = vector.broadcast %cst_3 : f32 to vector<1x10xf32>
    %10 = arith.mulf %9, %2 : vector<1x10xf32>
    %11 = arith.mulf %0, %0 : vector<8x10xf32>
    %cst_4 = arith.constant dense<0.000000e+00> : vector<8xf32>
    %12 = vector.multi_reduction <add>, %11, %cst_4 [1] : vector<8x10xf32> to vector<8xf32>
    %13 = vector.shape_cast %12 : vector<8xf32> to vector<8x1xf32>
    %cst_5 = arith.constant -5.000000e-01 : f32
    %14 = vector.broadcast %cst_5 : f32 to vector<8x1xf32>
    %15 = arith.mulf %14, %13 : vector<8x1xf32>
    %cst_6 = arith.constant -9.18938541 : f32
    %16 = vector.broadcast %cst_6 : f32 to vector<8x1xf32>
    %17 = arith.addf %15, %16 : vector<8x1xf32>
    %cst_7 = arith.constant 1.000000e+00 : f32
    %18 = vector.broadcast %cst_7 : f32 to vector<1x10xf32>
    %19 = arith.addf %2, %18 : vector<1x10xf32>
    %cst_8 = arith.constant 5.000000e-02 : f32
    %20 = vector.broadcast %cst_8 : f32 to vector<1x10xf32>
    %21 = arith.mulf %20, %19 : vector<1x10xf32>
    %cst_9 = arith.constant 1.000000e+00 : f32
    %22 = vector.broadcast %cst_9 : f32 to vector<1x10xf32>
    %23 = arith.addf %22, %21 : vector<1x10xf32>
    %24 = vector.broadcast %23 : vector<1x10xf32> to vector<8x10xf32>
    %25 = arith.mulf %0, %24 : vector<8x10xf32>
    %cst_10 = arith.constant 0.00999999977 : f32
    %26 = vector.broadcast %cst_10 : f32 to vector<8x10xf32>
    %27 = arith.addf %25, %26 : vector<8x10xf32>
    %28 = arith.mulf %27, %27 : vector<8x10xf32>
    %cst_11 = arith.constant dense<0.000000e+00> : vector<8xf32>
    %29 = vector.multi_reduction <add>, %28, %cst_11 [1] : vector<8x10xf32> to vector<8xf32>
    %30 = vector.shape_cast %29 : vector<8xf32> to vector<8x1xf32>
    %cst_12 = arith.constant -5.000000e-01 : f32
    %31 = vector.broadcast %cst_12 : f32 to vector<8x1xf32>
    %32 = arith.mulf %31, %30 : vector<8x1xf32>
    %cst_13 = arith.constant -9.18938541 : f32
    %33 = vector.broadcast %cst_13 : f32 to vector<8x1xf32>
    %34 = arith.addf %32, %33 : vector<8x1xf32>
    %cst_14 = arith.constant 2.36529708 : f32
    %35 = vector.broadcast %cst_14 : f32 to vector<8x1xf32>
    %36 = arith.subf %17, %35 : vector<8x1xf32>
    %37 = vector.broadcast %8 : vector<1x10xf32> to vector<8x10xf32>
    %38 = arith.mulf %27, %37 : vector<8x10xf32>
    %39 = vector.broadcast %10 : vector<1x10xf32> to vector<8x10xf32>
    %40 = arith.addf %38, %39 : vector<8x10xf32>
    %41 = math.tanh %40 : vector<8x10xf32>
    %c0_15 = arith.constant 0 : index
    %c0_16 = arith.constant 0 : index
    %c0_17 = arith.constant 0 : index
    %42 = vector.load %arg1[%c0_15, %c0_16, %c0_17] : memref<2x8x10xf32, #tpu.memory_space<vmem>>, vector<1x8x10xf32>
    %43 = vector.shape_cast %42 : vector<1x8x10xf32> to vector<8x10xf32>
    %44 = vector.shape_cast %41 : vector<8x10xf32> to vector<1x8x10xf32>
    tpu.vector_store %arg1[%c0_15, %c0_16, %c0_17], %44 {strides = array<i32>} : memref<2x8x10xf32, #tpu.memory_space<vmem>>, vector<1x8x10xf32>,
    %45 = arith.mulf %41, %41 : vector<8x10xf32>
    %cst_18 = arith.constant 1.000000e+00 : f32
    %46 = vector.broadcast %cst_18 : f32 to vector<8x10xf32>
    %47 = arith.subf %46, %45 : vector<8x10xf32>
    %cst_19 = arith.constant 9.99999997E-7 : f32
    %48 = vector.broadcast %cst_19 : f32 to vector<8x10xf32>
    %49 = arith.addf %47, %48 : vector<8x10xf32>
    %50 = math.log %49 : vector<8x10xf32>
    %cst_20 = arith.constant dense<0.000000e+00> : vector<8xf32>
    %51 = vector.multi_reduction <add>, %50, %cst_20 [1] : vector<8x10xf32> to vector<8xf32>
    %52 = vector.shape_cast %51 : vector<8xf32> to vector<8x1xf32>
    %cst_21 = arith.constant -2.7261188 : f32
    %53 = vector.broadcast %cst_21 : f32 to vector<8x1xf32>
    %54 = arith.addf %52, %53 : vector<8x1xf32>
    %55 = arith.addf %34, %54 : vector<8x1xf32>
    %56 = arith.subf %36, %55 : vector<8x1xf32>
    %cst_22 = arith.constant 1.000000e+00 : f32
    %57 = vector.broadcast %cst_22 : f32 to vector<1x10xf32>
    %58 = arith.addf %2, %57 : vector<1x10xf32>
    %cst_23 = arith.constant 1.000000e-01 : f32
    %59 = vector.broadcast %cst_23 : f32 to vector<1x10xf32>
    %60 = arith.mulf %59, %58 : vector<1x10xf32>
    %cst_24 = arith.constant 1.000000e+00 : f32
    %61 = vector.broadcast %cst_24 : f32 to vector<1x10xf32>
    %62 = arith.addf %61, %60 : vector<1x10xf32>
    %63 = vector.broadcast %62 : vector<1x10xf32> to vector<8x10xf32>
    %64 = arith.mulf %0, %63 : vector<8x10xf32>
    %cst_25 = arith.constant 2.000000e-02 : f32
    %65 = vector.broadcast %cst_25 : f32 to vector<8x10xf32>
    %66 = arith.addf %64, %65 : vector<8x10xf32>
    %67 = arith.mulf %66, %66 : vector<8x10xf32>
    %cst_26 = arith.constant dense<0.000000e+00> : vector<8xf32>
    %68 = vector.multi_reduction <add>, %67, %cst_26 [1] : vector<8x10xf32> to vector<8xf32>
    %69 = vector.shape_cast %68 : vector<8xf32> to vector<8x1xf32>
    %cst_27 = arith.constant -5.000000e-01 : f32
    %70 = vector.broadcast %cst_27 : f32 to vector<8x1xf32>
    %71 = arith.mulf %70, %69 : vector<8x1xf32>
    %cst_28 = arith.constant -9.18938541 : f32
    %72 = vector.broadcast %cst_28 : f32 to vector<8x1xf32>
    %73 = arith.addf %71, %72 : vector<8x1xf32>
    %cst_29 = arith.constant 4.20535278 : f32
    %74 = vector.broadcast %cst_29 : f32 to vector<8x1xf32>
    %75 = arith.subf %17, %74 : vector<8x1xf32>
    %76 = vector.broadcast %8 : vector<1x10xf32> to vector<8x10xf32>
    %77 = arith.mulf %66, %76 : vector<8x10xf32>
    %78 = vector.broadcast %10 : vector<1x10xf32> to vector<8x10xf32>
    %79 = arith.addf %77, %78 : vector<8x10xf32>
    %80 = math.tanh %79 : vector<8x10xf32>
    %c1 = arith.constant 1 : index
    %c0_30 = arith.constant 0 : index
    %c0_31 = arith.constant 0 : index
    %81 = vector.load %arg1[%c1, %c0_30, %c0_31] : memref<2x8x10xf32, #tpu.memory_space<vmem>>, vector<1x8x10xf32>
    %82 = vector.shape_cast %81 : vector<1x8x10xf32> to vector<8x10xf32>
    %83 = vector.shape_cast %80 : vector<8x10xf32> to vector<1x8x10xf32>
    tpu.vector_store %arg1[%c1, %c0_30, %c0_31], %83 {strides = array<i32>} : memref<2x8x10xf32, #tpu.memory_space<vmem>>, vector<1x8x10xf32>,
    %84 = arith.mulf %80, %80 : vector<8x10xf32>
    %cst_32 = arith.constant 1.000000e+00 : f32
    %85 = vector.broadcast %cst_32 : f32 to vector<8x10xf32>
    %86 = arith.subf %85, %84 : vector<8x10xf32>
    %cst_33 = arith.constant 9.99999997E-7 : f32
    %87 = vector.broadcast %cst_33 : f32 to vector<8x10xf32>
    %88 = arith.addf %86, %87 : vector<8x10xf32>
    %89 = math.log %88 : vector<8x10xf32>
    %cst_34 = arith.constant dense<0.000000e+00> : vector<8xf32>
    %90 = vector.multi_reduction <add>, %89, %cst_34 [1] : vector<8x10xf32> to vector<8xf32>
    %91 = vector.shape_cast %90 : vector<8xf32> to vector<8x1xf32>
    %cst_35 = arith.constant -2.7261188 : f32
    %92 = vector.broadcast %cst_35 : f32 to vector<8x1xf32>
    %93 = arith.addf %91, %92 : vector<8x1xf32>
    %94 = arith.addf %73, %93 : vector<8x1xf32>
    %95 = arith.subf %75, %94 : vector<8x1xf32>
    %96 = tpu.iota {dimensions = array<i32: 1>} : vector<8x4xi32>
    %cst_36 = arith.constant 0.000000e+00 : f32
    %97 = vector.broadcast %cst_36 : f32 to vector<8x4xf32>
    %c0_i32 = arith.constant 0 : i32
    %98 = vector.broadcast %c0_i32 : i32 to vector<8x4xi32>
    %99 = arith.cmpi eq, %96, %98 : vector<8x4xi32>
    %100 = vector.shape_cast %56 : vector<8x1xf32> to vector<8x1xf32>
    %101 = vector.broadcast %100 : vector<8x1xf32> to vector<8x4xf32>
    %102 = arith.select %99, %101, %97 : vector<8x4xi1>, vector<8x4xf32>
    %c1_i32 = arith.constant 1 : i32
    %103 = vector.broadcast %c1_i32 : i32 to vector<8x4xi32>
    %104 = arith.cmpi eq, %96, %103 : vector<8x4xi32>
    %105 = vector.shape_cast %34 : vector<8x1xf32> to vector<8x1xf32>
    %106 = vector.broadcast %105 : vector<8x1xf32> to vector<8x4xf32>
    %107 = arith.select %104, %106, %102 : vector<8x4xi1>, vector<8x4xf32>
    %c2_i32 = arith.constant 2 : i32
    %108 = vector.broadcast %c2_i32 : i32 to vector<8x4xi32>
    %109 = arith.cmpi eq, %96, %108 : vector<8x4xi32>
    %110 = vector.shape_cast %95 : vector<8x1xf32> to vector<8x1xf32>
    %111 = vector.broadcast %110 : vector<8x1xf32> to vector<8x4xf32>
    %112 = arith.select %109, %111, %107 : vector<8x4xi1>, vector<8x4xf32>
    %c3_i32 = arith.constant 3 : i32
    %113 = vector.broadcast %c3_i32 : i32 to vector<8x4xi32>
    %114 = arith.cmpi eq, %96, %113 : vector<8x4xi32>
    %115 = vector.shape_cast %73 : vector<8x1xf32> to vector<8x1xf32>
    %116 = vector.broadcast %115 : vector<8x1xf32> to vector<8x4xf32>
    %117 = arith.select %114, %116, %112 : vector<8x4xi1>, vector<8x4xf32>
    %c0_37 = arith.constant 0 : index
    %c0_38 = arith.constant 0 : index
    %118 = vector.load %arg2[%c0_37, %c0_38] : memref<8x4xf32, #tpu.memory_space<vmem>>, vector<8x4xf32>
    tpu.vector_store %arg2[%c0_37, %c0_38], %117 {strides = array<i32>} : memref<8x4xf32, #tpu.memory_space<vmem>>, vector<8x4xf32>,
    return
  }
}

</mosaic_0001>

<bundles_post_ra>
// kernel: tpu_custom_call.1
= control target key start
LH: loop header
LB: loop body
LE: loop exit
PB: predicated region body
PF: predicated region fallthrough
CT: control target
= control target key end

     0   :  { %8 = vsyncpa [#allocation3], 0  ;;  %s243_s0 = inlined_call_operand.hbm [shape: f32[8,10], index: 0, kind: input, shape index: {}]   ;;  %s244_s1 = inlined_call_operand.hbm [shape: f32[2,8,10], index: 1, kind: output, shape index: {0}]   ;;  %s245_s2 = inlined_call_operand.vmem [shape: f32[8,4], index: 2, kind: output, shape index: {1}]  }
   0x1   :  { %9 = vsyncpa [#allocation4], 0  ;;  %s183_s9 = smov [#allocation2]   ;;  %s135_s13 = scalar_lea.hbm %s243_s0, 128 }
   0x2   :  { %s16_s10 = sshll.u32 %s183_s9, 4  ;;  %p136_p0 = scmp.ne.s32.totalorder %s243_s0, %s135_s13  ;;  %s17_s10 = int_to_ptr.vmem [resolvable:$true] %s16_s10 }
   0x3   :  { %p139_p1 = scmp.lt.u32.totalorder %s135_s13, %s243_s0 }
   0x5   :  { %p141_p2 = pnand %p139_p1, %p136_p0 }
   0x7   :  { %144 = shalt.err (!%p141_p2)
}
   0x8   :  { %s145_s18 = scalar_lea.vmem %s17_s10, 128  ;;  %p150_p4 = scmp.lt.s32.totalorder %s17_s10, %s17_s10 }
   0x9   :  { %p146_p3 = scmp.ne.s32.totalorder %s17_s10, %s145_s18  ;;  %p151_p5 = scmp.lt.s32.totalorder %s145_s18, %s145_s18 }
   0xb   :  { %p152_p6 = por %p151_p5, %p150_p4 }
   0xd   :  { %p153_p7 = pnand %p152_p6, %p146_p3 }
   0xf   :  { %156 = shalt.err (!%p153_p7)
}
  0x10   :  { %19 = dma.hbm_to_vmem [thread:$0]  %s243_s0, 128, %s17_s10, [#allocation3]  }
  0x11   :  { %179 = dma.done.wait [#allocation3], 128  }
  0x12   :  { %180 = vsyncadd [#allocation3], 4294967168  ;;  %v24_v0 = vlaneseq  ;;  %v23_v4 = vld [vmem:[#allocation2] sm:$0xff]  ;;  %vm32_vm0 = vcmask 80896   ;;  %s184_s0 = smov [#allocation5]  }
  0x13   :  { %v31_v5 = vmul.f32 %v23_v4, %v23_v4  ;;  %s105_s21 = sshll.u32 %s184_s0, 4  ;;  %s106_s21 = int_to_ptr.vmem [resolvable:$true] %s105_s21 }
  0x14   :  { %v214_v1 = vand.u32 127, %v24_v0  ;;  %s157_s22 = scalar_lea.vmem %s106_s21, 256  ;;  %p162_p9 = scmp.lt.s32.totalorder %s106_s21, %s106_s21 }
  0x15   :  { %v33_v8 = vsel %vm32_vm0, %v31_v5, 0.0  ;;  %p158_p8 = scmp.ne.s32.totalorder %s106_s21, %s157_s22  ;;  %p163_p10 = scmp.lt.s32.totalorder %s157_s22, %s157_s22 }
  0x16   :  { %v26_v2 = vcvt.s32.f32 %v214_v1  ;;  %34 = vadd.xlane.f32.xlu0 %v33_v8 }
  0x17   :  { %p164_p11 = por %p163_p10, %p162_p9 }
  0x18   :  { %v27_v3 = vadd.f32 1.0, %v26_v2  ;;  %v30_v14 = vmul.f32 0.1, %v26_v2 }
  0x19   :  { %p165_p12 = pnand %p164_p11, %p158_p8 }
  0x1a   :  { %v28_v6 = vmul.f32 0.05, %v27_v3  ;;  %v63_v7 = vmul.f32 0.1, %v27_v3 }
  0x1c   :  { %v38_v9 = vadd.f32 1.0, %v28_v6  ;;  %v64_v10 = vadd.f32 1.0, %v63_v7  ;;  %v29_v11 = vadd.f32 0.5, %v28_v6 }
  0x1e   :  { %v39_v12 = vmul.f32 %v38_v9, %v23_v4  ;;  %v65_v13 = vmul.f32 %v64_v10, %v23_v4 }
  0x20   :  { %v40_v15 = vadd.f32 0.01, %v39_v12  ;;  %v66_v16 = vadd.f32 0.02, %v65_v13 }
  0x22   :  { %v41_v17 = vmul.f32 %v40_v15, %v40_v15  ;;  %v48_v18 = vmul.f32 %v40_v15, %v29_v11  ;;  %v74_v19 = vmul.f32 %v66_v16, %v29_v11  ;;  %v67_v34 = vmul.f32 %v66_v16, %v66_v16 }
  0x24   :  { %v42_v20 = vsel %vm32_vm0, %v41_v17, 0.0  ;;  %v49_v21 = vadd.f32 %v48_v18, %v30_v14  ;;  %v75_v22 = vadd.f32 %v74_v19, %v30_v14  ;;  %v68_v38 = vsel %vm32_vm0, %v67_v34, 0.0 }
  0x25   :  { %43 = vadd.xlane.f32.xlu0 %v42_v20 }
  0x26   :  { %127 = vtanh.f32 %v49_v21 }
  0x27   :  { %129 = vtanh.f32 %v75_v22 }
  0x30   :  { %v128_v23 = vpop.eup %127 }
  0x31   :  { %v130_v24 = vpop.eup %129  ;;  %51 = vst.msk [vmem:[#allocation5] sm:$0xff] %vm32_vm0, %v128_v23  ;;  %v52_v25 = vmul.f32 %v128_v23, %v128_v23 }
  0x32   :  { %78 = vst.msk [vmem:[#allocation5 + $0x8] sm:$0xff] %vm32_vm0, %v130_v24  ;;  %v79_v26 = vmul.f32 %v130_v24, %v130_v24 }
  0x33   :  { %v53_v27 = vsub.f32 1.0, %v52_v25 }
  0x34   :  { %v80_v28 = vsub.f32 1.0, %v79_v26 }
  0x35   :  { %v54_v29 = vadd.f32 1e-06, %v53_v27 }
  0x36   :  { %v81_v30 = vadd.f32 1e-06, %v80_v28 }
  0x37   :  { %131 = vlog2.f32 %v54_v29 }
  0x38   :  { %133 = vlog2.f32 %v81_v30 }
  0x41   :  { %v132_v31 = vpop.eup %131 }
  0x42   :  { %v134_v32 = vpop.eup %133  ;;  %v56_v33 = vmul.f32 0.6931472, %v132_v31 }
  0x43   :  { %v83_v35 = vmul.f32 0.6931472, %v134_v32 }
  0x44   :  { %v57_v36 = vsel %vm32_vm0, %v56_v33, 0.0 }
  0x45   :  { %58 = vadd.xlane.f32.xlu1 %v57_v36  ;;  %v84_v37 = vsel %vm32_vm0, %v83_v35, 0.0 }
  0x46   :  { %85 = vadd.xlane.f32.xlu0 %v84_v37 }
  0x49   :  { %69 = vadd.xlane.f32.xlu1 %v68_v38 }
  0x4a   :  { %168 = shalt.err (!%p165_p12)
}
  0x4b   :  { %s169_s25 = scalar_lea.hbm %s244_s1, 256 }
  0x4c   :  { %p170_p13 = scmp.ne.s32.totalorder %s244_s1, %s169_s25  ;;  %p173_p0 = scmp.lt.u32.totalorder %s169_s25, %s244_s1 }
  0x4e   :  { %p175_p1 = pnand %p173_p0, %p170_p13 }
  0x50   :  { %178 = shalt.err (!%p175_p1)
}
  0x51   :  { %s185_s30 = smov 128   ;;  %s186_s3 = smov 8   ;;  %vm90_vm1 = vcmp.eq.s32.totalorder %v214_v1, 0  ;;  %vm92_vm2 = vcmp.eq.s32.totalorder %v214_v1, 1  ;;  %vm94_vm3 = vcmp.eq.s32.totalorder %v214_v1, 2  ;;  %vm96_vm4 = vcmp.eq.s32.totalorder %v214_v1, 3 }
  0x52   :  { %111 = dma.vmem_to_hbm [thread:$0]  %s106_s21, 256, %s244_s1, [#allocation4], %s185_s30, %s185_s30, %s186_s3   ;;  %vm98_vm5 = vcmask 31744  }
  0xa3   :  { %v35_v39 = vpop.xlane.xlu0 %34 }
  0xa4   :  { %v36_v41 = vmul.f32 -0.5, %v35_v39 }
  0xa6   :  { %v37_v43 = vadd.f32 -9.189385, %v36_v41 }
  0xa8   :  { %v121_v46 = vadd.f32 -2.365297, %v37_v43  ;;  %v122_v55 = vadd.f32 -4.205353, %v37_v43 }
  0xb2   :  { %v44_v40 = vpop.xlane.xlu0 %43 }
  0xb3   :  { %v45_v42 = vmul.f32 -0.5, %v44_v40 }
  0xb5   :  { %v46_v44 = vadd.f32 -9.189385, %v45_v42 }
  0xd2   :  { %v59_v45 = vpop.xlane.xlu1 %58 }
  0xd3   :  { %v60_v47 = vadd.f32 -2.7261188, %v59_v45  ;;  %v86_v48 = vpop.xlane.xlu0 %85 }
  0xd4   :  { %v87_v53 = vadd.f32 -2.7261188, %v86_v48 }
  0xd5   :  { %v61_v49 = vadd.f32 %v60_v47, %v46_v44 }
  0xd6   :  { %v70_v50 = vpop.xlane.xlu1 %69 }
  0xd7   :  { %v62_v51 = vsub.f32 %v121_v46, %v61_v49  ;;  %v71_v52 = vmul.f32 -0.5, %v70_v50 }
  0xd9   :  { %v72_v54 = vadd.f32 -9.189385, %v71_v52  ;;  %v91_v56 = vsel %vm90_vm1, %v62_v51, 0.0 }
  0xda   :  { %v93_v59 = vsel %vm92_vm2, %v46_v44, %v91_v56 }
  0xdb   :  { %v88_v57 = vadd.f32 %v87_v53, %v72_v54 }
  0xdd   :  { %v89_v58 = vsub.f32 %v122_v55, %v88_v57 }
  0xdf   :  { %v95_v60 = vsel %vm94_vm3, %v89_v58, %v93_v59 }
  0xe0   :  { %v97_v61 = vsel %vm96_vm4, %v72_v54, %v95_v60 }
  0xe1   :  { %99 = vst.msk [vmem:[%s245_s2] sm:$0xff] %vm98_vm5, %v97_v61 }
  0xe2   :  { %181 = dma.done.wait [#allocation4], 256  }
  0xe3   :  { %182 = vsyncadd [#allocation4], 4294967040 }
  0xe4   :  { %119 = vsyncpa [#allocation3], 1 }
  0xe5   :  { %120 = vsyncpa [#allocation4], 1 }

</bundles_post_ra>
